<compile_context>
chip_gen: v5e
topology: v5e:2x2
jax: 0.10.0
libtpu: 0.0.40
codegen_flags: <defaults>
</compile_context>

<pallas_src>
import functools

import jax
import jax.numpy as jnp
from jax.experimental import pallas as pl
from jax.experimental.pallas import tpu as pltpu

_NEG_BIG = -1.0e30  # finite "minus infinity" for padded vocab columns


def _sft_chosen_logprob_kernel(logits_ref, labels_ref, mask_ref, out_ref,
                               m_ref, l_ref, c_ref, *, block_v, vocab):
    """Per (batch, row-tile, vocab-tile) step of (logit[label] - logsumexp)*mask."""
    v = pl.program_id(2)

    @pl.when(v == 0)
    def _():
        m_ref[...] = jnp.full_like(m_ref, -jnp.inf)
        l_ref[...] = jnp.zeros_like(l_ref)
        c_ref[...] = jnp.zeros_like(c_ref)

    # Load this (tn, tv) tile; cast to f32 on the VPU (inputs may be bf16).
    x = logits_ref[...].astype(jnp.float32)
    col = jax.lax.broadcasted_iota(jnp.int32, x.shape, 1)        # lane iota

    # Mask columns past the real vocab in the ragged last vocab tile. Only
    # traced when V is not a multiple of the tile (zero cost otherwise).
    if vocab % block_v != 0:
        x = jnp.where(col < (vocab - v * block_v), x, _NEG_BIG)

    # Online logsumexp over the vocab axis.
    m_prev = m_ref[...]                                          # (tn, 1)
    m_new = jnp.maximum(m_prev, jnp.max(x, axis=-1, keepdims=True))
    l_ref[...] = l_ref[...] * jnp.exp(m_prev - m_new) + jnp.sum(
        jnp.exp(x - m_new), axis=-1, keepdims=True)
    m_ref[...] = m_new

    # "Gather" the label logit: one-hot select within this vocab tile. The
    # tile offset is subtracted from the (tn,1) labels, not added to the
    # (tn,tv) iota, saving one full-tile VALU op per element.
    hit = col == (labels_ref[...] - v * block_v)                 # (tn, tv)
    c_ref[...] += jnp.sum(jnp.where(hit, x, 0.0), axis=-1, keepdims=True)

    @pl.when(v == pl.num_programs(2) - 1)
    def _():
        lse = m_ref[...] + jnp.log(l_ref[...])
        out_ref[...] = (c_ref[...] - lse) * mask_ref[...]


def _round_up(a, b):
    return (a + b - 1) // b * b


def sft_sum_loss(logits, labels, mask, beta: float = 0.1):
    """SFT Sum Regularization Loss. logits: [B, S, V], labels/mask: [B, S]."""
    B, S, V = logits.shape
    T = S - 1

    # Fixed, large tiles (lane/sublane aligned). Ragged edges are handled by
    # Pallas partial blocks (seq) and in-kernel column masking (vocab).
    tn = min(256, _round_up(T, 8))
    tv = min(4096, _round_up(V, 128))
    t_pad = _round_up(T, tn)
    num_r = t_pad // tn
    num_v = pl.cdiv(V, tv)

    # Next-token shift applied ONLY to labels/mask (tiny, B*S elements); they
    # are padded so their blocks (and the output blocks) are always full.
    # Padded rows carry mask == 0 and are sliced off before the reduction.
    labels_s = labels[:, 1:].astype(jnp.int32)
    mask_s = mask[:, 1:].astype(jnp.bool_).astype(jnp.float32)
    labels_p = jnp.pad(labels_s, ((0, 0), (0, t_pad - T)))[..., None]   # (B, t_pad, 1)
    mask_p = jnp.pad(mask_s, ((0, 0), (0, t_pad - T)))[..., None]       # (B, t_pad, 1)

    grid = (B, num_r, num_v)

    bytes_per_elt = jnp.dtype(logits.dtype).itemsize
    cost = pl.CostEstimate(
        flops=6 * B * T * V,
        transcendentals=B * T * V,
        bytes_accessed=B * T * V * bytes_per_elt + 3 * B * T * 4,
    )

    per_token = pl.pallas_call(
        functools.partial(_sft_chosen_logprob_kernel, block_v=tv, vocab=V),
        out_shape=jax.ShapeDtypeStruct((B, t_pad, 1), jnp.float32),
        grid_spec=pltpu.PrefetchScalarGridSpec(
            num_scalar_prefetch=0,
            grid=grid,
            in_specs=[
                # Full, unshifted logits: the kernel only reads seq rows [0, T)
                # (plus a possibly-padded ragged edge that is sliced off below);
                # no sliced/reshaped/padded HBM copy is ever materialized.
                pl.BlockSpec((None, tn, tv), lambda b, r, v: (b, r, v)),
                pl.BlockSpec((None, tn, 1), lambda b, r, v: (b, r, 0)),   # labels
                pl.BlockSpec((None, tn, 1), lambda b, r, v: (b, r, 0)),   # mask
            ],
            out_specs=pl.BlockSpec((None, tn, 1), lambda b, r, v: (b, r, 0)),
            scratch_shapes=[
                pltpu.VMEM((tn, 1), jnp.float32),  # running max
                pltpu.VMEM((tn, 1), jnp.float32),  # running sum-exp
                pltpu.VMEM((tn, 1), jnp.float32),  # chosen-logit accumulator
            ],
        ),
        compiler_params=pltpu.CompilerParams(
            dimension_semantics=("parallel", "parallel", "arbitrary"),
            vmem_limit_bytes=32 * 1024 * 1024,
        ),
        cost_estimate=cost,
    )(logits, labels_p, mask_p)

    # Tiny O(B*T) finalization: drop padded rows, per-sequence sum, loss.
    valid_log_probs = per_token[:, :T, 0].sum(axis=1)
    return jnp.mean(-jax.nn.log_sigmoid(beta * valid_log_probs))


def _reference_sft_sum_loss(logits, labels, mask, beta):
    """Pure-JAX port of the PyTorch module for cross-checking."""
    labels_s = labels[:, 1:]
    logits_s = logits[:, :-1, :].astype(jnp.float32)
    mask_s = mask[:, 1:].astype(jnp.bool_)
    logp = jax.nn.log_softmax(logits_s, axis=-1)
    chosen = jnp.take_along_axis(logp, labels_s[..., None].astype(jnp.int32),
                                 axis=-1)[..., 0]
    chosen = chosen * mask_s
    vlp = chosen.sum(axis=1)
    return jnp.mean(-jax.nn.log_sigmoid(beta * vlp))


if __name__ == "__main__":
    key = jax.random.PRNGKey(0)
    beta = 0.1

    # Case 1: f32 logits, lane-aligned vocab (no ragged edges).
    k1, k2, k3, k4, k5, k6 = jax.random.split(key, 6)
    B, S, V = 2, 9, 256
    logits = jax.random.normal(k1, (B, S, V), dtype=jnp.float32)
    labels = jax.random.randint(k2, (B, S), 0, V, dtype=jnp.int32)
    mask = (jax.random.uniform(k3, (B, S)) > 0.3).astype(jnp.float32)

    loss = sft_sum_loss(logits, labels, mask, beta=beta)
    jax.block_until_ready(loss)
    ref = _reference_sft_sum_loss(logits, labels, mask, beta)
    assert jnp.allclose(loss, ref, atol=1e-4, rtol=1e-4), (loss, ref)

    # Case 2: bf16 logits (in-kernel cast), ragged vocab (V % 128 != 0) and a
    # seq tile that overhangs the array (exercises partial-block + masking).
    B2, S2, V2 = 2, 7, 200
    logits2 = jax.random.normal(k4, (B2, S2, V2), dtype=jnp.bfloat16)
    labels2 = jax.random.randint(k5, (B2, S2), 0, V2, dtype=jnp.int32)
    mask2 = (jax.random.uniform(k6, (B2, S2)) > 0.3).astype(jnp.float32)

    loss2 = sft_sum_loss(logits2, labels2, mask2, beta=beta)
    jax.block_until_ready(loss2)
    ref2 = _reference_sft_sum_loss(logits2, labels2, mask2, beta)
    assert jnp.allclose(loss2, ref2, atol=1e-3, rtol=1e-3), (loss2, ref2)

    print("KERNEL_OK")
</pallas_src>

<mosaic_0001>
module attributes {stable_mosaic.version = 11 : i64} {
  func.func @_sft_chosen_logprob_kernel(%arg0: i32, %arg1: i32, %arg2: i32, %arg3: memref<1x8x256xf32, #tpu.memory_space<vmem>>, %arg4: memref<1x8x1xi32, #tpu.memory_space<vmem>>, %arg5: memref<1x8x1xf32, #tpu.memory_space<vmem>>, %arg6: memref<1x8x1xf32, #tpu.memory_space<vmem>>, %arg7: memref<8x1xf32, #tpu.memory_space<vmem>>, %arg8: memref<8x1xf32, #tpu.memory_space<vmem>>, %arg9: memref<8x1xf32, #tpu.memory_space<vmem>>) attributes {dimension_semantics = [#tpu.dimension_semantics<parallel>, #tpu.dimension_semantics<parallel>, #tpu.dimension_semantics<arbitrary>], iteration_bounds = array<i64: 2, 1, 1>, scalar_prefetch = 0 : i64, scratch_operands = 3 : i64, tpu.core_type = #tpu.core_type<tc>, window_params = [{transform_indices = @transform_0, window_bounds = array<i64: 1, 8, 256>}, {transform_indices = @transform_1, window_bounds = array<i64: 1, 8, 1>}, {transform_indices = @transform_2, window_bounds = array<i64: 1, 8, 1>}, {transform_indices = @transform_3, window_bounds = array<i64: 1, 8, 1>}]} {
    %c0_i32 = arith.constant 0 : i32
    %0 = arith.cmpi eq, %arg2, %c0_i32 : i32
    %1 = arith.extui %0 : i1 to i32
    %c0_i32_0 = arith.constant 0 : i32
    %2 = arith.cmpi ne, %1, %c0_i32_0 : i32
    scf.if %2 {
      %cst_23 = arith.constant 0xFF800000 : f32
      %39 = vector.broadcast %cst_23 : f32 to vector<8x1xf32>
      %c0_24 = arith.constant 0 : index
      %c0_25 = arith.constant 0 : index
      %40 = vector.load %arg7[%c0_24, %c0_25] : memref<8x1xf32, #tpu.memory_space<vmem>>, vector<8x1xf32>
      tpu.vector_store %arg7[%c0_24, %c0_25], %39 {strides = array<i32>} : memref<8x1xf32, #tpu.memory_space<vmem>>, vector<8x1xf32>,
      %cst_26 = arith.constant 0.000000e+00 : f32
      %41 = vector.broadcast %cst_26 : f32 to vector<8x1xf32>
      %c0_27 = arith.constant 0 : index
      %c0_28 = arith.constant 0 : index
      %42 = vector.load %arg8[%c0_27, %c0_28] : memref<8x1xf32, #tpu.memory_space<vmem>>, vector<8x1xf32>
      tpu.vector_store %arg8[%c0_27, %c0_28], %41 {strides = array<i32>} : memref<8x1xf32, #tpu.memory_space<vmem>>, vector<8x1xf32>,
      %cst_29 = arith.constant 0.000000e+00 : f32
      %43 = vector.broadcast %cst_29 : f32 to vector<8x1xf32>
      %c0_30 = arith.constant 0 : index
      %c0_31 = arith.constant 0 : index
      %44 = vector.load %arg9[%c0_30, %c0_31] : memref<8x1xf32, #tpu.memory_space<vmem>>, vector<8x1xf32>
      tpu.vector_store %arg9[%c0_30, %c0_31], %43 {strides = array<i32>} : memref<8x1xf32, #tpu.memory_space<vmem>>, vector<8x1xf32>,
    } else {
    }
    %c0 = arith.constant 0 : index
    %c0_1 = arith.constant 0 : index
    %c0_2 = arith.constant 0 : index
    %3 = vector.load %arg3[%c0, %c0_1, %c0_2] : memref<1x8x256xf32, #tpu.memory_space<vmem>>, vector<1x8x256xf32>
    %4 = vector.shape_cast %3 : vector<1x8x256xf32> to vector<8x256xf32>
    %5 = tpu.iota {dimensions = array<i32: 1>} : vector<8x256xi32>
    %c0_3 = arith.constant 0 : index
    %c0_4 = arith.constant 0 : index
    %6 = vector.load %arg7[%c0_3, %c0_4] : memref<8x1xf32, #tpu.memory_space<vmem>>, vector<8x1xf32>
    %cst = arith.constant dense<0xFF800000> : vector<8xf32>
    %7 = vector.multi_reduction <maximumf>, %4, %cst [1] : vector<8x256xf32> to vector<8xf32>
    %8 = vector.shape_cast %7 : vector<8xf32> to vector<8x1xf32>
    %9 = arith.maximumf %6, %8 : vector<8x1xf32>
    %c0_5 = arith.constant 0 : index
    %c0_6 = arith.constant 0 : index
    %10 = vector.load %arg8[%c0_5, %c0_6] : memref<8x1xf32, #tpu.memory_space<vmem>>, vector<8x1xf32>
    %11 = arith.subf %6, %9 : vector<8x1xf32>
    %12 = math.exp %11 : vector<8x1xf32>
    %13 = arith.mulf %10, %12 : vector<8x1xf32>
    %14 = vector.broadcast %9 : vector<8x1xf32> to vector<8x256xf32>
    %15 = arith.subf %4, %14 : vector<8x256xf32>
    %16 = math.exp %15 : vector<8x256xf32>
    %cst_7 = arith.constant dense<0.000000e+00> : vector<8xf32>
    %17 = vector.multi_reduction <add>, %16, %cst_7 [1] : vector<8x256xf32> to vector<8xf32>
    %18 = vector.shape_cast %17 : vector<8xf32> to vector<8x1xf32>
    %19 = arith.addf %13, %18 : vector<8x1xf32>
    %c0_8 = arith.constant 0 : index
    %c0_9 = arith.constant 0 : index
    %20 = vector.load %arg8[%c0_8, %c0_9] : memref<8x1xf32, #tpu.memory_space<vmem>>, vector<8x1xf32>
    tpu.vector_store %arg8[%c0_8, %c0_9], %19 {strides = array<i32>} : memref<8x1xf32, #tpu.memory_space<vmem>>, vector<8x1xf32>,
    %c0_10 = arith.constant 0 : index
    %c0_11 = arith.constant 0 : index
    %21 = vector.load %arg7[%c0_10, %c0_11] : memref<8x1xf32, #tpu.memory_space<vmem>>, vector<8x1xf32>
    tpu.vector_store %arg7[%c0_10, %c0_11], %9 {strides = array<i32>} : memref<8x1xf32, #tpu.memory_space<vmem>>, vector<8x1xf32>,
    %c0_12 = arith.constant 0 : index
    %c0_13 = arith.constant 0 : index
    %c0_14 = arith.constant 0 : index
    %22 = vector.load %arg4[%c0_12, %c0_13, %c0_14] : memref<1x8x1xi32, #tpu.memory_space<vmem>>, vector<1x8x1xi32>
    %23 = vector.shape_cast %22 : vector<1x8x1xi32> to vector<8x1xi32>
    %c256_i32 = arith.constant 256 : i32
    %24 = arith.muli %arg2, %c256_i32 : i32
    %25 = vector.broadcast %24 : i32 to vector<8x1xi32>
    %26 = arith.subi %23, %25 : vector<8x1xi32>
    %27 = vector.broadcast %26 : vector<8x1xi32> to vector<8x256xi32>
    %28 = arith.cmpi eq, %5, %27 : vector<8x256xi32>
    %c0_15 = arith.constant 0 : index
    %c0_16 = arith.constant 0 : index
    %29 = vector.load %arg9[%c0_15, %c0_16] : memref<8x1xf32, #tpu.memory_space<vmem>>, vector<8x1xf32>
    %cst_17 = arith.constant 0.000000e+00 : f32
    %30 = vector.broadcast %cst_17 : f32 to vector<8x256xf32>
    %31 = arith.select %28, %4, %30 : vector<8x256xi1>, vector<8x256xf32>
    %cst_18 = arith.constant dense<0.000000e+00> : vector<8xf32>
    %32 = vector.multi_reduction <add>, %31, %cst_18 [1] : vector<8x256xf32> to vector<8xf32>
    %33 = vector.shape_cast %32 : vector<8xf32> to vector<8x1xf32>
    %34 = arith.addf %29, %33 : vector<8x1xf32>
    %c0_19 = arith.constant 0 : index
    %c0_20 = arith.constant 0 : index
    %35 = vector.load %arg9[%c0_19, %c0_20] : memref<8x1xf32, #tpu.memory_space<vmem>>, vector<8x1xf32>
    tpu.vector_store %arg9[%c0_19, %c0_20], %34 {strides = array<i32>} : memref<8x1xf32, #tpu.memory_space<vmem>>, vector<8x1xf32>,
    %c0_i32_21 = arith.constant 0 : i32
    %36 = arith.cmpi eq, %arg2, %c0_i32_21 : i32
    %37 = arith.extui %36 : i1 to i32
    %c0_i32_22 = arith.constant 0 : i32
    %38 = arith.cmpi ne, %37, %c0_i32_22 : i32
    scf.if %38 {
      %c0_23 = arith.constant 0 : index
      %c0_24 = arith.constant 0 : index
      %39 = vector.load %arg7[%c0_23, %c0_24] : memref<8x1xf32, #tpu.memory_space<vmem>>, vector<8x1xf32>
      %c0_25 = arith.constant 0 : index
      %c0_26 = arith.constant 0 : index
      %40 = vector.load %arg8[%c0_25, %c0_26] : memref<8x1xf32, #tpu.memory_space<vmem>>, vector<8x1xf32>
      %41 = math.log %40 : vector<8x1xf32>
      %42 = arith.addf %39, %41 : vector<8x1xf32>
      %c0_27 = arith.constant 0 : index
      %c0_28 = arith.constant 0 : index
      %43 = vector.load %arg9[%c0_27, %c0_28] : memref<8x1xf32, #tpu.memory_space<vmem>>, vector<8x1xf32>
      %44 = arith.subf %43, %42 : vector<8x1xf32>
      %c0_29 = arith.constant 0 : index
      %c0_30 = arith.constant 0 : index
      %c0_31 = arith.constant 0 : index
      %45 = vector.load %arg5[%c0_29, %c0_30, %c0_31] : memref<1x8x1xf32, #tpu.memory_space<vmem>>, vector<1x8x1xf32>
      %46 = vector.shape_cast %45 : vector<1x8x1xf32> to vector<8x1xf32>
      %47 = arith.mulf %44, %46 : vector<8x1xf32>
      %c0_32 = arith.constant 0 : index
      %c0_33 = arith.constant 0 : index
      %c0_34 = arith.constant 0 : index
      %48 = vector.load %arg6[%c0_32, %c0_33, %c0_34] : memref<1x8x1xf32, #tpu.memory_space<vmem>>, vector<1x8x1xf32>
      %49 = vector.shape_cast %48 : vector<1x8x1xf32> to vector<8x1xf32>
      %50 = vector.shape_cast %47 : vector<8x1xf32> to vector<1x8x1xf32>
      tpu.vector_store %arg6[%c0_32, %c0_33, %c0_34], %50 {strides = array<i32>} : memref<1x8x1xf32, #tpu.memory_space<vmem>>, vector<1x8x1xf32>,
    } else {
    }
    return
  }
  func.func @transform_0(%arg0: i32, %arg1: i32, %arg2: i32) -> (i32, i32, i32) {
    %c0_i32 = arith.constant 0 : i32
    return %arg0, %arg1, %arg2 : i32, i32, i32
  }
  func.func @transform_1(%arg0: i32, %arg1: i32, %arg2: i32) -> (i32, i32, i32) {
    %c0_i32 = arith.constant 0 : i32
    %c0_i32_0 = arith.constant 0 : i32
    return %arg0, %arg1, %c0_i32 : i32, i32, i32
  }
  func.func @transform_2(%arg0: i32, %arg1: i32, %arg2: i32) -> (i32, i32, i32) {
    %c0_i32 = arith.constant 0 : i32
    %c0_i32_0 = arith.constant 0 : i32
    return %arg0, %arg1, %c0_i32 : i32, i32, i32
  }
  func.func @transform_3(%arg0: i32, %arg1: i32, %arg2: i32) -> (i32, i32, i32) {
    %c0_i32 = arith.constant 0 : i32
    %c0_i32_0 = arith.constant 0 : i32
    return %arg0, %arg1, %c0_i32 : i32, i32, i32
  }
}

</mosaic_0001>

<bundles_post_ra>
// kernel: tpu_custom_call.1
= control target key start
LH: loop header
LB: loop body
LE: loop exit
PB: predicated region body
PF: predicated region fallthrough
CT: control target
= control target key end

     0   :  { %s566_s12 = smov 0   ;;  %s568_s13 = smov 0   ;;  %s617_s0 = inlined_call_operand.vmem [shape: f32[2,9,256], index: 0, kind: input, shape index: {}]   ;;  %s618_s1 = inlined_call_operand.vmem [shape: s32[2,8,1], index: 1, kind: input, shape index: {}]   ;;  %s619_s2 = inlined_call_operand.vmem [shape: f32[2,8,1], index: 2, kind: input, shape index: {}]   ;;  %s620_s3 = inlined_call_operand.vmem [shape: f32[2,8,1], index: 3, kind: output, shape index: {}]  }
   0x1   :  { %s570_s14 = smov 0  }
   0x2 LB: > { %s32_s15 = sadd.s32 1, %s537_s13  ;;  %p473_p0 = scmp.ge.s32.totalorder %s541_s14, 1  ;;  %s541_s14 = sphi %s570_s14, %s13_s14   ;;  %s537_s13 = sphi %s568_s13, %s622_s13   ;;  %s533_s12 = sphi %s566_s12, %s621_s12  }
   0x3   : > { %p34_p1 = scmp.ge.s32.totalorder %s32_s15, 2  ;;  %p199_p2 = scmp.lt.s32.totalorder %s541_s14, 3 }
   0x5   : > { %s624_s15 = smov (%p34_p1, %s32_s15), 0  ;;  %p200_p3 = pnand %p473_p0, %p199_p2 }
   0x6   : > { %p248_p4 = scmp.lt.s32.totalorder (!%p200_p3), %s533_s12, 1 }
   0x7   : > { %203 = sbr.rel (%p200_p3) target bundleno = 407 (0x197), region = 32 }
   0xc   : > { %vm286_vm0 = vcmask 7168   ;;  %v543_v0 = vmov -inf   ;;  %s626_s12 = smov (!%p248_p4, %s533_s12), 1  ;;  %v544_v4 = vmov 0   ;;  %v545_v5 = vmov 0.0  }
   0xd   : > { %287 = vst.msk [vmem:[#allocation2] sm:$0xff] %vm286_vm0, %v543_v0  ;;  %s481_s16 = sshll.u32 %s626_s12, 5  ;;  %509 = vset.pattern.permute.xlu0 %v544_v4  ;;  %510 = vset.pattern.permute.xlu1 %v544_v4  ;;  %s588_s20 = sshll.u32 %s626_s12, 3  ;;  %v292_v11 = vlaneseq }
   0xe   : > { %s259_s19 = scalar_lea.vmem %s617_s0, %s481_s16  ;;  %s267_s23 = scalar_lea.vmem %s618_s1, %s588_s20  ;;  %288 = vst.msk [vmem:[#allocation3] sm:$0xff] %vm286_vm0, %v545_v5 }
   0xf   : > { %v290_v1 = vld [vmem:[%s259_s19] sm:$0xff]  ;;  %v291_v2 = vld [vmem:[%s259_s19 + $0x8] sm:$0xff]  ;;  %289 = vst.msk [vmem:[#allocation4] sm:$0xff] %vm286_vm0, %v545_v5  ;;  %v293_v13 = vand.u32 127, %v292_v11  ;;  %s274_s26 = scalar_lea.vmem %s619_s2, %s588_s20  ;;  %s281_s29 = scalar_lea.vmem %s620_s3, %s588_s20 }
  0x10   : > { %v296_v3 = vmax.f32 %v290_v1, %v291_v2  ;;  %v323_v6 = vld [vmem:[%s267_s23] sm:$0xff] }
  0x11   : > { %328 = vperm.xlu1 %510, %v323_v6   ;;  %v294_v14 = vadd.s32 128, %v293_v13  ;;  %v350_v41 = vld [vmem:[%s274_s26] sm:$0xff] }
  0x12   : > { %297 = vmax.xlane.f32.xlu0 %v296_v3 }
  0x14   : > { %v295_v7 = vld [vmem:[#allocation2] sm:$0xff] }
  0x15   : > { %v300_v31 = vld [vmem:[#allocation3] sm:$0xff] }
  0x16   : > { %v332_v26 = vld [vmem:[#allocation4] sm:$0xff] }
  0x83   : > { %v329_v12 = vpop.permute.xlu1 %328 }
  0x84   : > { %vm330_vm1 = vcmp.eq.s32.totalorder %v293_v13, %v329_v12  ;;  %vm331_vm2 = vcmp.eq.s32.totalorder %v294_v14, %v329_v12 }
  0x85   : > { %v298_v8 = vpop.xlane.xlu0 %297  ;;  %v333_v15 = vsel %vm330_vm1, %v290_v1, 0.0  ;;  %v334_v16 = vsel %vm331_vm2, %v291_v2, 0.0 }
  0x86   : > { %v299_v9 = vmax.f32 %v295_v7, %v298_v8  ;;  %v335_v17 = vadd.f32 %v334_v16, %v333_v15 }
  0x88   : > { %v301_v10 = vsub.f32 %v295_v7, %v299_v9  ;;  %322 = vst.msk [vmem:[#allocation2] sm:$0xff] %vm286_vm0, %v299_v9  ;;  %307 = vperm.xlu0 %509, %v299_v9   ;;  %336 = vadd.xlane.f32.xlu2 %v335_v17 }
  0x8a   : > { %v302_v29 = vmul.f32 1.442695, %v301_v10 }
  0x8f   : > { %v343_v38 = vld [vmem:[#allocation2] sm:$0xff] }
  0xfa   : > { %v308_v18 = vpop.permute.xlu0 %307 }
  0xfb   : > { %v310_v19 = vsub.f32 %v290_v1, %v308_v18  ;;  %v311_v20 = vsub.f32 %v291_v2, %v308_v18  ;;  %v337_v27 = vpop.xlane.xlu2 %336 }
  0xfc   : > { %v338_v28 = vadd.f32 %v337_v27, %v332_v26 }
  0xfd   : > { %v312_v21 = vmul.f32 1.442695, %v310_v19  ;;  %v314_v22 = vmul.f32 1.442695, %v311_v20 }
  0xfe   : > { %339 = vst.msk [vmem:[#allocation4] sm:$0xff] %vm286_vm0, %v338_v28 }
  0xff   : > { %511 = vpow2.f32 %v312_v21 }
 0x100   : > { %513 = vpow2.f32 %v314_v22 }
 0x101   : > { %515 = vpow2.f32 %v302_v29 }
 0x105   : > { %v512_v23 = vpop.eup %511  ;;  %v348_v39 = vld [vmem:[#allocation4] sm:$0xff] }
 0x106   : > { %v514_v24 = vpop.eup %513 }
 0x107   : > { %v316_v25 = vadd.f32 %v514_v24, %v512_v23  ;;  %v516_v30 = vpop.eup %515 }
 0x108   : > { %v304_v32 = vmul.f32 %v516_v30, %v300_v31 }
 0x109   : > { %317 = vadd.xlane.f32.xlu1 %v316_v25 }
 0x17c   : > { %v318_v33 = vpop.xlane.xlu1 %317 }
 0x17d   : > { %v319_v34 = vadd.f32 %v318_v33, %v304_v32 }
 0x17f   : > { %321 = vst.msk [vmem:[#allocation3] sm:$0xff] %vm286_vm0, %v319_v34 }
 0x186   : > { %v344_v35 = vld [vmem:[#allocation3] sm:$0xff] }
 0x187   : > { %517 = vlog2.f32 %v344_v35 }
 0x18d   : > { %v518_v36 = vpop.eup %517 }
 0x18e   : > { %v346_v37 = vmul.f32 0.6931472, %v518_v36 }
 0x190   : > { %v347_v40 = vadd.f32 %v346_v37, %v343_v38 }
 0x192   : > { %v349_v42 = vsub.f32 %v348_v39, %v347_v40 }
 0x194   : > { %v351_v43 = vmul.f32 %v350_v41, %v349_v42 }
 0x196   : > { %352 = vst.msk [vmem:[%s281_s29] sm:$0xff] %vm286_vm0, %v351_v43 }
 0x197 PF: > { %s13_s14 = sadd.s32 1, %s541_s14   ;;  %s621_s12 = smov %s537_s13 }
 0x198   : > { %p10_p5 = scmp.ge.s32.totalorder %s13_s14, 4   ;;  %s622_s13 = smov %s624_s15 }
 0x19a   :  { %12 = sbr.rel (!%p10_p5) target bundleno = 2 (0x2), region = 76 }

</bundles_post_ra>
